<compile_context>
chip_gen: v7x
topology: tpu7x:2x2x1
jax: 0.10.0
libtpu: 0.0.40
codegen_flags: <defaults>
</compile_context>

<pallas_src>
import math
import jax
import jax.numpy as jnp
from jax.experimental import pallas as pl
from jax.experimental.pallas import tpu as pltpu


def _round_up(x, m):
    return ((x + m - 1) // m) * m


def _tile_plan(n_nodes, tile_n, tile_k):
    """Shared tile plan so prepare_adj() and gcn_forward() agree on shapes."""
    # Rows (sublane axis of adj / output): multiple of 8; at least 2 row tiles
    # when possible so both v7x TensorCores get work on the "parallel" axis.
    half_rows = -(-n_nodes // 2)
    tile_n = max(8, min(tile_n, _round_up(half_rows, 8)))
    n_rows_p = _round_up(n_nodes, tile_n)
    # Contraction (lane axis of adj / sublane axis of support): multiple of 128.
    tile_k = max(128, min(tile_k, _round_up(n_nodes, 128)))
    n_k_p = _round_up(n_nodes, tile_k)
    return tile_n, tile_k, n_rows_p, n_k_p


def prepare_adj(adj, *, tile_n=1024, tile_k=2048, dtype=jnp.bfloat16):
    """One-time pad + cast of the dense adjacency.

    Call once per graph and reuse the result across GCN layers / training
    steps so the O(N^2) pad/cast pass is not paid on every forward call.
    """
    n = adj.shape[0]
    _, _, n_rows_p, n_k_p = _tile_plan(n, tile_n, tile_k)
    if adj.shape == (n_rows_p, n_k_p) and adj.dtype == dtype:
        return adj
    out = jnp.zeros((n_rows_p, n_k_p), dtype)
    return out.at[:n, :n].set(adj[:n, :n].astype(dtype))


# ----------------------------- kernels ---------------------------------------


def support_kernel(x_ref, w_ref, s_ref):
    # support tile = X_tile @ W  (bf16 operands, f32 MXU accumulation)
    s = jnp.dot(x_ref[...], w_ref[...], preferred_element_type=jnp.float32)
    s_ref[...] = s.astype(s_ref.dtype)


def _make_stage2_kernel(tile_k, support_resident):
    """out = adj @ support + bias, grid = (row tiles [parallel], k [arbitrary])."""

    def kernel(adj_ref, s_ref, b_ref, o_ref, acc_ref):
        k = pl.program_id(1)

        @pl.when(k == 0)
        def _():
            acc_ref[...] = jnp.zeros_like(acc_ref)

        # adj may arrive as f32 (zero-copy wrapper path) or bf16 (prepared);
        # cast on the VPU right before the MXU dot (kernel is DMA-bound).
        adj_tile = adj_ref[...].astype(jnp.bfloat16)
        if support_resident:
            start = pl.multiple_of(k * tile_k, tile_k)
            s_tile = s_ref[pl.ds(start, tile_k), :]
        else:
            s_tile = s_ref[...]

        acc_ref[...] += jnp.dot(adj_tile, s_tile, preferred_element_type=jnp.float32)

        @pl.when(k == pl.num_programs(1) - 1)
        def _():
            o_ref[...] = (acc_ref[...] + b_ref[...]).astype(o_ref.dtype)

    return kernel


# ----------------------------- wrapper ----------------------------------------


def gcn_forward(x, adj, weight, bias=None, *, tile_n=1024, tile_k=2048):
    """GCN layer: adj @ (x @ weight) + bias.

    `adj` may be the raw (N, N) adjacency (any float dtype) or the output of
    `prepare_adj()` (padded bf16), which should be reused across layers.
    """
    N, in_f = x.shape
    out_f = weight.shape[1]

    f32, bf16 = jnp.float32, jnp.bfloat16
    out_f_p = _round_up(out_f, 128)  # lane-dense output; do not pad further
    tile_n, tile_k, n_rows_p, n_k_p = _tile_plan(N, tile_n, tile_k)

    # ---- adjacency: avoid per-call O(N^2) pad/cast copies whenever possible.
    if adj.shape == (n_rows_p, n_k_p):
        adj_in = adj                       # pre-prepared, or no padding needed
    elif adj.shape == (N, N) and n_rows_p == N and n_k_p == N:
        adj_in = adj                       # zero-copy: cast to bf16 in-kernel
    elif adj.shape == (N, N):
        # One-time pad + bf16 cast; hoist via prepare_adj() when reusing graph.
        adj_in = prepare_adj(adj, tile_n=tile_n, tile_k=tile_k)
    else:
        raise ValueError(f"adj shape {adj.shape} incompatible with N={N}")

    # ---- small operands: bf16 cast + pad (O(N*in_f), O(in_f*out_f) -- cheap).
    if n_k_p == N:
        x_p = x.astype(bf16)
    else:
        x_p = jnp.zeros((n_k_p, in_f), bf16).at[:N, :].set(x.astype(bf16))
    w_p = jnp.zeros((in_f, out_f_p), bf16).at[:, :out_f].set(weight.astype(bf16))
    if bias is None:
        b_p = jnp.zeros((1, out_f_p), f32)
    else:
        b_p = jnp.zeros((1, out_f_p), f32).at[0, :out_f].set(bias.astype(f32))

    # ---- Stage 1: support = X @ W, computed once (hoisted out of adj loop).
    support = pl.pallas_call(
        support_kernel,
        out_shape=jax.ShapeDtypeStruct((n_k_p, out_f_p), bf16),
        grid_spec=pltpu.PrefetchScalarGridSpec(
            num_scalar_prefetch=0,
            grid=(n_k_p // tile_k,),
            in_specs=[
                pl.BlockSpec((tile_k, in_f), lambda i: (i, 0)),     # X row tile
                pl.BlockSpec((in_f, out_f_p), lambda i: (0, 0)),    # W (full, small)
            ],
            out_specs=pl.BlockSpec((tile_k, out_f_p), lambda i: (i, 0)),
        ),
        compiler_params=pltpu.CompilerParams(
            dimension_semantics=("parallel",),
        ),
    )(x_p, w_p)

    # ---- Stage 2: out = adj @ support + bias (rows parallel, K reduction last).
    adj_bytes = jnp.dtype(adj_in.dtype).itemsize
    support_bytes = n_k_p * out_f_p * 2
    support_resident = support_bytes <= (8 << 20)   # pin support in VMEM if small

    if support_resident:
        s_spec = pl.BlockSpec((n_k_p, out_f_p), lambda i, k: (0, 0))
        s_vmem = 2 * support_bytes
    else:
        s_spec = pl.BlockSpec((tile_k, out_f_p), lambda i, k: (k, 0))
        s_vmem = 2 * tile_k * out_f_p * 2

    vmem_est = (
        2 * tile_n * tile_k * adj_bytes       # adj tile, double-buffered
        + s_vmem                              # support (resident or streamed slab)
        + 2 * 8 * out_f_p * 4                 # bias (8-sublane padded)
        + 2 * tile_n * out_f_p * 4            # output tile, double-buffered
        + tile_n * out_f_p * 4                # f32 accumulator scratch
    )
    # Clamp to 48 MiB so defaults stay within v7x's 64 MiB physical VMEM,
    # but never under-provision the actual tile footprint.
    vmem_limit = int(min(max(2 * vmem_est, 32 << 20), 48 << 20))
    vmem_limit = max(vmem_limit, vmem_est + (4 << 20))

    out_p = pl.pallas_call(
        _make_stage2_kernel(tile_k, support_resident),
        out_shape=jax.ShapeDtypeStruct((n_rows_p, out_f_p), f32),
        grid_spec=pltpu.PrefetchScalarGridSpec(
            num_scalar_prefetch=0,
            grid=(n_rows_p // tile_n, n_k_p // tile_k),
            in_specs=[
                pl.BlockSpec((tile_n, tile_k), lambda i, k: (i, k)),  # adj tile
                s_spec,                                               # support
                pl.BlockSpec((1, out_f_p), lambda i, k: (0, 0)),      # bias
            ],
            out_specs=pl.BlockSpec((tile_n, out_f_p), lambda i, k: (i, 0)),
            scratch_shapes=[pltpu.VMEM((tile_n, out_f_p), f32)],
        ),
        compiler_params=pltpu.CompilerParams(
            dimension_semantics=("parallel", "arbitrary"),
            vmem_limit_bytes=vmem_limit,
        ),
    )(adj_in, support, b_p)

    return out_p[:N, :out_f].astype(x.dtype)


# ----------------------------- reference & test --------------------------------


def gcn_reference(x, adj, weight, bias=None):
    support = jnp.dot(x, weight, precision=jax.lax.Precision.HIGHEST)
    out = jnp.dot(adj, support, precision=jax.lax.Precision.HIGHEST)
    if bias is not None:
        out = out + bias[None, :]
    return out


def _make_inputs(key, N, in_features, out_features):
    k_x, k_adj, k_w, k_b = jax.random.split(key, 4)

    x = jax.random.normal(k_x, (N, in_features), dtype=jnp.float32)

    # Symmetric row-normalized dense adjacency (stands in for torch sparse adj).
    a = (jax.random.uniform(k_adj, (N, N)) < 0.05).astype(jnp.float32)
    a = a + a.T + jnp.eye(N, dtype=jnp.float32)
    a = jnp.minimum(a, 1.0)
    deg = jnp.sum(a, axis=1, keepdims=True)
    adj = a / deg

    # Deterministic parameter init matching reset_parameters():
    # uniform(-stdv, stdv) with stdv = 1/sqrt(out_features).
    stdv = 1.0 / math.sqrt(out_features)
    weight = jax.random.uniform(
        k_w, (in_features, out_features), minval=-stdv, maxval=stdv, dtype=jnp.float32
    )
    bias = jax.random.uniform(
        k_b, (out_features,), minval=-stdv, maxval=stdv, dtype=jnp.float32
    )
    return x, adj, weight, bias


def _check(out, ref, N, out_features, tag):
    assert out.shape == (N, out_features)
    # adj/support go through the MXU in bf16 with f32 accumulation.
    assert jnp.allclose(out, ref, atol=3e-2, rtol=3e-2), (
        f"mismatch vs reference ({tag}, N={N}): "
        f"max abs err {float(jnp.max(jnp.abs(out - ref)))}"
    )


if __name__ == "__main__":
    in_features = 64
    out_features = 32
    key = jax.random.PRNGKey(0)
    keys = jax.random.split(key, 2)

    # Case 1: N=256 -> tiles divide N exactly, adj is passed zero-copy (f32,
    # cast to bf16 in-kernel).  Case 2: N=200 -> exercises the padded path and
    # the hoisted prepare_adj() reuse path.
    for case_key, N in zip(keys, (256, 200)):
        x, adj, weight, bias = _make_inputs(case_key, N, in_features, out_features)
        ref = gcn_reference(x, adj, weight, bias)

        out = jax.block_until_ready(gcn_forward(x, adj, weight, bias))
        _check(out, ref, N, out_features, "raw adj")

        # Prepared (pad + bf16 cast done once, reusable across layers/steps).
        adj_prep = jax.block_until_ready(prepare_adj(adj))
        out_prep = jax.block_until_ready(gcn_forward(x, adj_prep, weight, bias))
        _check(out_prep, ref, N, out_features, "prepared adj")

    # bias=None path.
    x, adj, weight, _ = _make_inputs(keys[0], 256, in_features, out_features)
    out_nb = jax.block_until_ready(gcn_forward(x, adj, weight, None))
    _check(out_nb, gcn_reference(x, adj, weight, None), 256, out_features, "no bias")

    print("KERNEL_OK")
</pallas_src>

<mosaic_0001>
module attributes {stable_mosaic.version = 11 : i64} {
  func.func @support_kernel(%arg0: i32, %arg1: memref<256x64xbf16, #tpu.memory_space<vmem>>, %arg2: memref<64x128xbf16, #tpu.memory_space<vmem>>, %arg3: memref<256x128xbf16, #tpu.memory_space<vmem>>) attributes {dimension_semantics = [#tpu.dimension_semantics<parallel>], iteration_bounds = array<i64: 1>, scalar_prefetch = 0 : i64, scratch_operands = 0 : i64, tpu.core_type = #tpu.core_type<tc>, window_params = [{transform_indices = @transform_0, window_bounds = array<i64: 256, 64>}, {pipeline_mode = #tpu.pipeline_mode<synchronous>, transform_indices = @transform_1, window_bounds = array<i64: 64, 128>}, {transform_indices = @transform_2, window_bounds = array<i64: 256, 128>}]} {
    %c0 = arith.constant 0 : index
    %c0_0 = arith.constant 0 : index
    %0 = vector.load %arg1[%c0, %c0_0] : memref<256x64xbf16, #tpu.memory_space<vmem>>, vector<256x64xbf16>
    %c0_1 = arith.constant 0 : index
    %c0_2 = arith.constant 0 : index
    %1 = vector.load %arg2[%c0_1, %c0_2] : memref<64x128xbf16, #tpu.memory_space<vmem>>, vector<64x128xbf16>
    %cst = arith.constant dense<0.000000e+00> : vector<256x128xf32>
    %2 = tpu.matmul %0, %1, %cst {dimension_numbers = #tpu.dot_dimension_numbers<[1], [0], [0], [1], [0, 0, 1, 1], [], []>} : vector<256x64xbf16>, vector<64x128xbf16>, vector<256x128xf32> -> vector<256x128xf32>
    %3 = arith.truncf %2 : vector<256x128xf32> to vector<256x128xbf16>
    %c0_3 = arith.constant 0 : index
    %c0_4 = arith.constant 0 : index
    %4 = vector.load %arg3[%c0_3, %c0_4] : memref<256x128xbf16, #tpu.memory_space<vmem>>, vector<256x128xbf16>
    tpu.vector_store %arg3[%c0_3, %c0_4], %3 {strides = array<i32>} : memref<256x128xbf16, #tpu.memory_space<vmem>>, vector<256x128xbf16>,
    return
  }
  func.func @transform_0(%arg0: i32) -> (i32, i32) {
    %c0_i32 = arith.constant 0 : i32
    %c0_i32_0 = arith.constant 0 : i32
    return %arg0, %c0_i32 : i32, i32
  }
  func.func @transform_1(%arg0: i32) -> (i32, i32) {
    %c0_i32 = arith.constant 0 : i32
    %c0_i32_0 = arith.constant 0 : i32
    %c0_i32_1 = arith.constant 0 : i32
    return %c0_i32, %c0_i32_0 : i32, i32
  }
  func.func @transform_2(%arg0: i32) -> (i32, i32) {
    %c0_i32 = arith.constant 0 : i32
    %c0_i32_0 = arith.constant 0 : i32
    return %arg0, %c0_i32 : i32, i32
  }
}

</mosaic_0001>

<bundles_post_ra>
// kernel: tpu_custom_call.1
= control target key start
LH: loop header
LB: loop body
LE: loop exit
PB: predicated region body
PF: predicated region fallthrough
CT: control target
= control target key end

     0   :  { %vm157_vm0 = vcmask 523264   ;;  %s959_s0 = inlined_call_operand.vmem [shape: bf16[256,64], index: 0, kind: input, shape index: {}]   ;;  %s960_s1 = inlined_call_operand.vmem [shape: bf16[64,128], index: 1, kind: input, shape index: {}]   ;;  %s961_s2 = inlined_call_operand.hbm [shape: bf16[256,128], index: 2, kind: output, shape index: {}]  }
   0x1   :  { %v809_v0 = vld [vmem:[%s960_s1] sm:$0xff]   ;;  %v810_v1 = vld [vmem:[%s960_s1 + $0x8] sm:$0xff]   ;;  %v811_v2 = vld [vmem:[%s960_s1 + $0x10] sm:$0xff]  }
   0x2   :  { %758 = vmatprep.subr.bf16.mxu0 %v809_v0  ;;  %798 = vmatprep.subr.bf16.mxu1 %v809_v0  ;;  %v813_v3 = vld [vmem:[%s959_s0] sm:$0xff]   ;;  %v812_v5 = vld [vmem:[%s960_s1 + $0x18] sm:$0xff]   ;;  %v815_v6 = vld [vmem:[%s959_s0 + $0x8] sm:$0xff]  }
   0x3   :  { %759 = vmatpush3.bf16.msra.mxu0 %v809_v0  ;;  %802 = vmatpush3.bf16.msra.mxu1 %v809_v0  ;;  %v814_v4 = vld [vmem:[%s959_s0 + $0x40] sm:$0xff]   ;;  %v816_v7 = vld [vmem:[%s959_s0 + $0x48] sm:$0xff]   ;;  %v817_v8 = vld [vmem:[%s959_s0 + $0x10] sm:$0xff]  }
   0x4   :  { %760 = vmatprep.subr.bf16.mxu0 %v810_v1  ;;  %799 = vmatprep.subr.bf16.mxu1 %v810_v1  ;;  %v818_v9 = vld [vmem:[%s959_s0 + $0x50] sm:$0xff]  }
   0x5   :  { %766 = vmatprep.mubr.msk.bf16.mxu0 %vm157_vm0, %v813_v3  ;;  %782 = vmatprep.mubr.msk.bf16.mxu1 %vm157_vm0, %v814_v4 }
   0x7   :  { %761 = vmatpush3.bf16.msra.mxu0 %v810_v1  ;;  %803 = vmatpush3.bf16.msra.mxu1 %v810_v1 }
   0x8   :  { %762 = vmatprep.subr.bf16.mxu0 %v811_v2  ;;  %800 = vmatprep.subr.bf16.mxu1 %v811_v2 }
   0xb   :  { %763 = vmatpush3.bf16.msra.mxu0 %v811_v2  ;;  %804 = vmatpush3.bf16.msra.mxu1 %v811_v2 }
   0xc   :  { %764 = vmatprep.subr.bf16.mxu0 %v812_v5  ;;  %801 = vmatprep.subr.bf16.mxu1 %v812_v5 }
   0xf   :  { %765 = vmatpush3.bf16.msra.mxu0 %v812_v5  ;;  %805 = vmatpush3.bf16.msra.mxu1 %v812_v5 }
  0x12   :  { %767 = vmatmul.mubr.msk.bf16.vlgmr.msra.gmra.mrb[0].mxu0 %vm157_vm0, %v815_v6  ;;  %783 = vmatmul.mubr.msk.bf16.vlgmr.msra.gmra.mrb[0].mxu1 %vm157_vm0, %v816_v7 }
  0x13   :  { %770 = vmatprep.mubr.msk.bf16.mxu0 %vm157_vm0, %v817_v8  ;;  %786 = vmatprep.mubr.msk.bf16.mxu1 %vm157_vm0, %v818_v9 }
  0x14   :  { %7 = vsyncpa [#allocation3], 0  ;;  %v819_v10 = vld [vmem:[%s959_s0 + $0x18] sm:$0xff]   ;;  %v821_v12 = vld [vmem:[%s959_s0 + $0x20] sm:$0xff]  }
  0x15   :  { %v820_v11 = vld [vmem:[%s959_s0 + $0x58] sm:$0xff]   ;;  %v822_v13 = vld [vmem:[%s959_s0 + $0x60] sm:$0xff]   ;;  %v823_v14 = vld [vmem:[%s959_s0 + $0x28] sm:$0xff]  }
  0x16   :  { %v824_v15 = vld [vmem:[%s959_s0 + $0x68] sm:$0xff]   ;;  %v825_v16 = vld [vmem:[%s959_s0 + $0x30] sm:$0xff]   ;;  %v827_v18 = vld [vmem:[%s959_s0 + $0x38] sm:$0xff]  }
  0x17   :  { %v826_v17 = vld [vmem:[%s959_s0 + $0x70] sm:$0xff]   ;;  %v828_v19 = vld [vmem:[%s959_s0 + $0x78] sm:$0xff]   ;;  %s853_s0 = smov [#allocation2]  }
  0x18   :  { %s532_s20 = sshll.u32 %s853_s0, 4  ;;  %s533_s20 = int_to_ptr.vmem [resolvable:$true] %s532_s20 }
  0x19   :  { %s829_s21 = scalar_lea.vmem %s533_s20, 2048  ;;  %p834_p1 = scmp.lt.s32.totalorder %s533_s20, %s533_s20 }
  0x1a   :  { %771 = vmatmul.mubr.msk.bf16.gmra.mrb[4].mxu0 %vm157_vm0, %v819_v10  ;;  %787 = vmatmul.mubr.msk.bf16.gmra.mrb[4].mxu1 %vm157_vm0, %v820_v11  ;;  %p830_p0 = scmp.ne.s32.totalorder %s533_s20, %s829_s21  ;;  %p835_p2 = scmp.lt.s32.totalorder %s829_s21, %s829_s21 }
  0x1b   :  { %774 = vmatprep.mubr.msk.bf16.mxu0 %vm157_vm0, %v821_v12  ;;  %790 = vmatprep.mubr.msk.bf16.mxu1 %vm157_vm0, %v822_v13 }
  0x1c   :  { %p836_p3 = por %p835_p2, %p834_p1 }
  0x1e   :  { %p837_p4 = pnand %p836_p3, %p830_p0 }
  0x22   :  { %775 = vmatmul.mubr.msk.bf16.gmra.mrb[8].mxu0 %vm157_vm0, %v823_v14  ;;  %791 = vmatmul.mubr.msk.bf16.gmra.mrb[8].mxu1 %vm157_vm0, %v824_v15 }
  0x23   :  { %778 = vmatprep.mubr.msk.bf16.mxu0 %vm157_vm0, %v825_v16  ;;  %794 = vmatprep.mubr.msk.bf16.mxu1 %vm157_vm0, %v826_v17 }
  0x2a   :  { %779 = vmatmul.mubr.msk.bf16.gmra.mrb[12].mxu0 %vm157_vm0, %v827_v18  ;;  %795 = vmatmul.mubr.msk.bf16.gmra.mrb[12].mxu1 %vm157_vm0, %v828_v19 }
  0xe5   :  { %v768_v20 = vpop.f32.mrb[0].mxu0  ;;  %v784_v21 = vpop.f32.mrb[0].mxu1 }
  0xe6   :  { %v240_v22 = vpop.f32.mrb[1].mxu0  ;;  %v304_v23 = vpop.f32.mrb[1].mxu1 }
  0xe7   :  { %v769_v24 = vpop.f32.mrb[2].mxu0  ;;  %v785_v25 = vpop.f32.mrb[2].mxu1 }
  0xe8   :  { %v651_v26 = vpack.c.bf16 %v769_v24, %v768_v20  ;;  %v691_v27 = vpack.c.bf16 %v785_v25, %v784_v21  ;;  %v243_v28 = vpop.f32.mrb[3].mxu0  ;;  %v307_v29 = vpop.f32.mrb[3].mxu1 }
  0xe9   :  { %v646_v30 = vpack.c.bf16 %v243_v28, %v240_v22  ;;  %v686_v31 = vpack.c.bf16 %v307_v29, %v304_v23 }
  0xea   :  { %723 = vst [vmem:[#allocation2 + $0x8] sm:$0xff] %v651_v26   ;;  %731 = vst [vmem:[#allocation2 + $0x48] sm:$0xff] %v691_v27  }
  0xeb   :  { %647 = vst [vmem:[#allocation2] sm:$0xff] %v646_v30   ;;  %730 = vst [vmem:[#allocation2 + $0x40] sm:$0xff] %v686_v31  }
  0xed   :  { %v772_v32 = vpop.f32.mrb[4].mxu0  ;;  %v788_v33 = vpop.f32.mrb[4].mxu1 }
  0xee   :  { %v256_v34 = vpop.f32.mrb[5].mxu0  ;;  %v320_v35 = vpop.f32.mrb[5].mxu1 }
  0xef   :  { %v773_v36 = vpop.f32.mrb[6].mxu0  ;;  %v789_v37 = vpop.f32.mrb[6].mxu1 }
  0xf0   :  { %v661_v38 = vpack.c.bf16 %v773_v36, %v772_v32  ;;  %v701_v39 = vpack.c.bf16 %v789_v37, %v788_v33  ;;  %v259_v40 = vpop.f32.mrb[7].mxu0  ;;  %v323_v41 = vpop.f32.mrb[7].mxu1 }
  0xf1   :  { %v656_v42 = vpack.c.bf16 %v259_v40, %v256_v34  ;;  %v696_v43 = vpack.c.bf16 %v323_v41, %v320_v35 }
  0xf2   :  { %725 = vst [vmem:[#allocation2 + $0x18] sm:$0xff] %v661_v38   ;;  %733 = vst [vmem:[#allocation2 + $0x58] sm:$0xff] %v701_v39  }
  0xf3   :  { %724 = vst [vmem:[#allocation2 + $0x10] sm:$0xff] %v656_v42   ;;  %732 = vst [vmem:[#allocation2 + $0x50] sm:$0xff] %v696_v43  }
  0xf5   :  { %v776_v44 = vpop.f32.mrb[8].mxu0  ;;  %v792_v45 = vpop.f32.mrb[8].mxu1 }
  0xf6   :  { %v272_v46 = vpop.f32.mrb[9].mxu0  ;;  %v336_v47 = vpop.f32.mrb[9].mxu1 }
  0xf7   :  { %v777_v48 = vpop.f32.mrb[10].mxu0  ;;  %v793_v49 = vpop.f32.mrb[10].mxu1 }
  0xf8   :  { %v671_v50 = vpack.c.bf16 %v777_v48, %v776_v44  ;;  %v711_v51 = vpack.c.bf16 %v793_v49, %v792_v45  ;;  %v275_v52 = vpop.f32.mrb[11].mxu0  ;;  %v339_v53 = vpop.f32.mrb[11].mxu1 }
  0xf9   :  { %v666_v54 = vpack.c.bf16 %v275_v52, %v272_v46  ;;  %v706_v55 = vpack.c.bf16 %v339_v53, %v336_v47 }
  0xfa   :  { %727 = vst [vmem:[#allocation2 + $0x28] sm:$0xff] %v671_v50   ;;  %735 = vst [vmem:[#allocation2 + $0x68] sm:$0xff] %v711_v51  }
  0xfb   :  { %726 = vst [vmem:[#allocation2 + $0x20] sm:$0xff] %v666_v54   ;;  %734 = vst [vmem:[#allocation2 + $0x60] sm:$0xff] %v706_v55  }
  0xfd   :  { %v780_v56 = vpop.f32.mrb[12].mxu0  ;;  %v796_v57 = vpop.f32.mrb[12].mxu1 }
  0xfe   :  { %v288_v58 = vpop.f32.mrb[13].mxu0  ;;  %v352_v59 = vpop.f32.mrb[13].mxu1 }
  0xff   :  { %v781_v60 = vpop.f32.mrb[14].mxu0  ;;  %v797_v61 = vpop.f32.mrb[14].mxu1 }
 0x100   :  { %v681_v62 = vpack.c.bf16 %v781_v60, %v780_v56  ;;  %v721_v63 = vpack.c.bf16 %v797_v61, %v796_v57  ;;  %v291_v0 = vpop.f32.mrb[15].mxu0  ;;  %v355_v1 = vpop.f32.mrb[15].mxu1 }
 0x101   :  { %v676_v2 = vpack.c.bf16 %v291_v0, %v288_v58  ;;  %v716_v3 = vpack.c.bf16 %v355_v1, %v352_v59 }
 0x102   :  { %729 = vst [vmem:[#allocation2 + $0x38] sm:$0xff] %v681_v62   ;;  %737 = vst [vmem:[#allocation2 + $0x78] sm:$0xff] %v721_v63  }
 0x103   :  { %728 = vst [vmem:[#allocation2 + $0x30] sm:$0xff] %v676_v2   ;;  %736 = vst [vmem:[#allocation2 + $0x70] sm:$0xff] %v716_v3  }
 0x104   :  { %840 = shalt.err (!%p837_p4)
}
 0x105   :  { %s841_s24 = scalar_lea.hbm %s961_s2, 2048 }
 0x106   :  { %p842_p5 = scmp.ne.s32.totalorder %s961_s2, %s841_s24  ;;  %p845_p6 = scmp.lt.u32.totalorder %s841_s24, %s961_s2 }
 0x108   :  { %p847_p7 = pnand %p845_p6, %p842_p5 }
 0x10a   :  { %850 = shalt.err (!%p847_p7)
}
 0x10b   :  { %s854_s28 = smov 64   ;;  %s855_s29 = smov 4  }
 0x10c   :  { %538 = dma.vmem_to_hbm [thread:$0]  %s533_s20, 2048, %s961_s2, [#allocation3], %s854_s28, %s854_s28, %s855_s29  }
 0x10d   :  { %851 = dma.done.wait [#allocation3], 2048  }
 0x10e   :  { %852 = vsyncadd [#allocation3], 4294965248 }
 0x10f   :  { %542 = vsyncpa [#allocation3], 1 }

</bundles_post_ra>
